<compile_context>
chip_gen: v5e
topology: v5e:2x2
jax: 0.10.0
libtpu: 0.0.40
codegen_flags: <defaults>
</compile_context>

<pallas_src>
import jax
import jax.numpy as jnp
from jax.experimental import pallas as pl
from jax.experimental.pallas import tpu as pltpu


def mlp_kernel(x_ref, w1_ref, b1_ref, w2_ref, b2_ref, w3_ref, b3_ref, o_ref):
    # x_ref: (TB, 28) f32; weights bf16; biases f32 (1, N); o_ref: (TB, 1) f32.
    x = x_ref[...].astype(jnp.bfloat16)          # in-kernel cast (VPU, free)

    h1 = jnp.dot(x, w1_ref[...], preferred_element_type=jnp.float32)
    h1 = jnp.maximum(h1 + b1_ref[...], 0.0)                      # (TB, 60) f32
    # TODO(synk): nn.Dropout(p=config.dropout) — identity at inference; training
    # dropout would use pltpu.prng_seed + pltpu.stateful_bernoulli here.

    h2 = jnp.dot(h1.astype(jnp.bfloat16), w2_ref[...],
                 preferred_element_type=jnp.float32)
    h2 = jnp.maximum(h2 + b2_ref[...], 0.0)                      # (TB, 30) f32

    out = jnp.dot(h2.astype(jnp.bfloat16), w3_ref[...],
                  preferred_element_type=jnp.float32)
    out = out + b3_ref[...]                                      # (TB, 1) f32

    o_ref[...] = out.astype(o_ref.dtype)


def mlp_forward(x, params, *, tb=2048):
    """x: (B, 28) f32. Returns (B, 1) f32."""
    w1, b1, w2, b2, w3, b3 = params
    B = x.shape[0]

    # Tile size: clamp to B for small batches (block == full dim is always
    # legal); otherwise use tb (multiple of 8, sized well under scoped VMEM).
    TB = B if B <= tb else tb
    grid = (pl.cdiv(B, TB),)

    # Weights in bf16 (tiny, VMEM-resident; native MXU dtype). Biases stay f32.
    w1b, w2b, w3b = (w.astype(jnp.bfloat16) for w in (w1, w2, w3))

    def resident(arr):
        # Constant block index -> DMA'd once, stays VMEM-resident across grid.
        return pl.BlockSpec(arr.shape, lambda i: (0, 0))

    return pl.pallas_call(
        mlp_kernel,
        out_shape=jax.ShapeDtypeStruct((B, 1), jnp.float32),
        grid=grid,
        in_specs=[
            pl.BlockSpec((TB, 28), lambda i: (i, 0)),   # streamed f32 x tiles
            resident(w1b), resident(b1),
            resident(w2b), resident(b2),
            resident(w3b), resident(b3),
        ],
        out_specs=pl.BlockSpec((TB, 1), lambda i: (i, 0)),
        compiler_params=pltpu.CompilerParams(
            dimension_semantics=("parallel",),          # megacore on v7x
        ),
    )(x, w1b, b1, w2b, b2, w3b, b3)


def init_params(key):
    """Deterministic init mimicking torch.nn.Linear (uniform ±1/sqrt(fan_in))."""
    def linear(k, fan_in, fan_out):
        kw, kb = jax.random.split(k)
        bound = 1.0 / jnp.sqrt(float(fan_in))
        # Stored as (fan_in, fan_out) so the kernel does x @ W directly
        # (equivalent to torch's x @ W.T with W of shape (fan_out, fan_in)).
        w = jax.random.uniform(kw, (fan_in, fan_out), jnp.float32, -bound, bound)
        b = jax.random.uniform(kb, (1, fan_out), jnp.float32, -bound, bound)
        return w, b

    k1, k2, k3 = jax.random.split(key, 3)
    w1, b1 = linear(k1, 28, 60)
    w2, b2 = linear(k2, 60, 30)
    w3, b3 = linear(k3, 30, 1)
    return (w1, b1, w2, b2, w3, b3)


def reference_forward_f32(x, params):
    w1, b1, w2, b2, w3, b3 = params
    h1 = jnp.maximum(x @ w1 + b1, 0.0)
    h2 = jnp.maximum(h1 @ w2 + b2, 0.0)
    return h2 @ w3 + b3


def reference_forward_bf16(x, params):
    # Mirrors the kernel's mixed precision: bf16 matmul inputs, f32 accumulation.
    w1, b1, w2, b2, w3, b3 = params
    xb = x.astype(jnp.bfloat16)
    h1 = jnp.dot(xb, w1.astype(jnp.bfloat16), preferred_element_type=jnp.float32) + b1
    h1 = jnp.maximum(h1, 0.0)
    h2 = jnp.dot(h1.astype(jnp.bfloat16), w2.astype(jnp.bfloat16),
                 preferred_element_type=jnp.float32) + b2
    h2 = jnp.maximum(h2, 0.0)
    return jnp.dot(h2.astype(jnp.bfloat16), w3.astype(jnp.bfloat16),
                   preferred_element_type=jnp.float32) + b3


if __name__ == "__main__":
    key = jax.random.PRNGKey(0)
    kx, kp, kx2 = jax.random.split(key, 3)
    params = init_params(kp)

    # Small-shape sanity run (single tile, grid=(1,)).
    B = 8
    x = jax.random.normal(kx, (B, 28), jnp.float32)
    out = jax.block_until_ready(mlp_forward(x, params))
    assert out.shape == (B, 1), out.shape
    ref_b = reference_forward_bf16(x, params)
    ref_f = reference_forward_f32(x, params)
    assert jnp.allclose(out, ref_b, atol=1e-3, rtol=1e-3), "mismatch vs bf16 reference"
    assert jnp.allclose(out, ref_f, atol=5e-2, rtol=0.0), "mismatch vs f32 reference"

    # Multi-tile grid path (incl. a partial final block): exercises the
    # streamed/pipelined x DMA and the parallel batch axis.
    B2 = 4000
    x2 = jax.random.normal(kx2, (B2, 28), jnp.float32)
    out2 = jax.block_until_ready(mlp_forward(x2, params, tb=1024))
    assert out2.shape == (B2, 1), out2.shape
    ref2 = reference_forward_bf16(x2, params)
    assert jnp.allclose(out2, ref2, atol=1e-3, rtol=1e-3), "mismatch on tiled batch"

    print("KERNEL_OK")
</pallas_src>

<mosaic_0001>
module attributes {stable_mosaic.version = 11 : i64} {
  func.func @mlp_kernel(%arg0: i32, %arg1: memref<8x28xf32, #tpu.memory_space<vmem>>, %arg2: memref<28x60xbf16, #tpu.memory_space<vmem>>, %arg3: memref<1x60xf32, #tpu.memory_space<vmem>>, %arg4: memref<60x30xbf16, #tpu.memory_space<vmem>>, %arg5: memref<1x30xf32, #tpu.memory_space<vmem>>, %arg6: memref<30x1xbf16, #tpu.memory_space<vmem>>, %arg7: memref<1x1xf32, #tpu.memory_space<vmem>>, %arg8: memref<8x1xf32, #tpu.memory_space<vmem>>) attributes {dimension_semantics = [#tpu.dimension_semantics<parallel>], iteration_bounds = array<i64: 1>, scalar_prefetch = 0 : i64, scratch_operands = 0 : i64, tpu.core_type = #tpu.core_type<tc>, window_params = [{transform_indices = @transform_0, window_bounds = array<i64: 8, 28>}, {pipeline_mode = #tpu.pipeline_mode<synchronous>, transform_indices = @transform_1, window_bounds = array<i64: 28, 60>}, {pipeline_mode = #tpu.pipeline_mode<synchronous>, transform_indices = @transform_2, window_bounds = array<i64: 1, 60>}, {pipeline_mode = #tpu.pipeline_mode<synchronous>, transform_indices = @transform_3, window_bounds = array<i64: 60, 30>}, {pipeline_mode = #tpu.pipeline_mode<synchronous>, transform_indices = @transform_4, window_bounds = array<i64: 1, 30>}, {pipeline_mode = #tpu.pipeline_mode<synchronous>, transform_indices = @transform_5, window_bounds = array<i64: 30, 1>}, {pipeline_mode = #tpu.pipeline_mode<synchronous>, transform_indices = @transform_6, window_bounds = array<i64: 1, 1>}, {transform_indices = @transform_7, window_bounds = array<i64: 8, 1>}]} {
    %c0 = arith.constant 0 : index
    %c0_0 = arith.constant 0 : index
    %0 = vector.load %arg1[%c0, %c0_0] : memref<8x28xf32, #tpu.memory_space<vmem>>, vector<8x28xf32>
    %1 = arith.truncf %0 : vector<8x28xf32> to vector<8x28xbf16>
    %c0_1 = arith.constant 0 : index
    %c0_2 = arith.constant 0 : index
    %2 = vector.load %arg2[%c0_1, %c0_2] : memref<28x60xbf16, #tpu.memory_space<vmem>>, vector<28x60xbf16>
    %cst = arith.constant dense<0.000000e+00> : vector<8x60xf32>
    %3 = tpu.matmul %1, %2, %cst {dimension_numbers = #tpu.dot_dimension_numbers<[1], [0], [0], [1], [0, 0, 1, 1], [], []>} : vector<8x28xbf16>, vector<28x60xbf16>, vector<8x60xf32> -> vector<8x60xf32>
    %c0_3 = arith.constant 0 : index
    %c0_4 = arith.constant 0 : index
    %4 = vector.load %arg3[%c0_3, %c0_4] : memref<1x60xf32, #tpu.memory_space<vmem>>, vector<1x60xf32>
    %5 = vector.broadcast %4 : vector<1x60xf32> to vector<8x60xf32>
    %6 = arith.addf %3, %5 : vector<8x60xf32>
    %cst_5 = arith.constant 0.000000e+00 : f32
    %7 = vector.broadcast %cst_5 : f32 to vector<8x60xf32>
    %8 = arith.maximumf %6, %7 : vector<8x60xf32>
    %9 = arith.truncf %8 : vector<8x60xf32> to vector<8x60xbf16>
    %c0_6 = arith.constant 0 : index
    %c0_7 = arith.constant 0 : index
    %10 = vector.load %arg4[%c0_6, %c0_7] : memref<60x30xbf16, #tpu.memory_space<vmem>>, vector<60x30xbf16>
    %cst_8 = arith.constant dense<0.000000e+00> : vector<8x30xf32>
    %11 = tpu.matmul %9, %10, %cst_8 {dimension_numbers = #tpu.dot_dimension_numbers<[1], [0], [0], [1], [0, 0, 1, 1], [], []>} : vector<8x60xbf16>, vector<60x30xbf16>, vector<8x30xf32> -> vector<8x30xf32>
    %c0_9 = arith.constant 0 : index
    %c0_10 = arith.constant 0 : index
    %12 = vector.load %arg5[%c0_9, %c0_10] : memref<1x30xf32, #tpu.memory_space<vmem>>, vector<1x30xf32>
    %13 = vector.broadcast %12 : vector<1x30xf32> to vector<8x30xf32>
    %14 = arith.addf %11, %13 : vector<8x30xf32>
    %cst_11 = arith.constant 0.000000e+00 : f32
    %15 = vector.broadcast %cst_11 : f32 to vector<8x30xf32>
    %16 = arith.maximumf %14, %15 : vector<8x30xf32>
    %17 = arith.truncf %16 : vector<8x30xf32> to vector<8x30xbf16>
    %c0_12 = arith.constant 0 : index
    %c0_13 = arith.constant 0 : index
    %18 = vector.load %arg6[%c0_12, %c0_13] : memref<30x1xbf16, #tpu.memory_space<vmem>>, vector<30x1xbf16>
    %cst_14 = arith.constant dense<0.000000e+00> : vector<8x1xf32>
    %19 = tpu.matmul %17, %18, %cst_14 {dimension_numbers = #tpu.dot_dimension_numbers<[1], [0], [0], [1], [0, 0, 1, 1], [], []>} : vector<8x30xbf16>, vector<30x1xbf16>, vector<8x1xf32> -> vector<8x1xf32>
    %c0_15 = arith.constant 0 : index
    %c0_16 = arith.constant 0 : index
    %20 = vector.load %arg7[%c0_15, %c0_16] : memref<1x1xf32, #tpu.memory_space<vmem>>, vector<1x1xf32>
    %21 = vector.broadcast %20 : vector<1x1xf32> to vector<8x1xf32>
    %22 = arith.addf %19, %21 : vector<8x1xf32>
    %c0_17 = arith.constant 0 : index
    %c0_18 = arith.constant 0 : index
    %23 = vector.load %arg8[%c0_17, %c0_18] : memref<8x1xf32, #tpu.memory_space<vmem>>, vector<8x1xf32>
    tpu.vector_store %arg8[%c0_17, %c0_18], %22 {strides = array<i32>} : memref<8x1xf32, #tpu.memory_space<vmem>>, vector<8x1xf32>,
    return
  }
  func.func @transform_0(%arg0: i32) -> (i32, i32) {
    %c0_i32 = arith.constant 0 : i32
    %c0_i32_0 = arith.constant 0 : i32
    return %arg0, %c0_i32 : i32, i32
  }
  func.func @transform_1(%arg0: i32) -> (i32, i32) {
    %c0_i32 = arith.constant 0 : i32
    %c0_i32_0 = arith.constant 0 : i32
    %c0_i32_1 = arith.constant 0 : i32
    return %c0_i32, %c0_i32_0 : i32, i32
  }
  func.func @transform_2(%arg0: i32) -> (i32, i32) {
    %c0_i32 = arith.constant 0 : i32
    %c0_i32_0 = arith.constant 0 : i32
    %c0_i32_1 = arith.constant 0 : i32
    return %c0_i32, %c0_i32_0 : i32, i32
  }
  func.func @transform_3(%arg0: i32) -> (i32, i32) {
    %c0_i32 = arith.constant 0 : i32
    %c0_i32_0 = arith.constant 0 : i32
    %c0_i32_1 = arith.constant 0 : i32
    return %c0_i32, %c0_i32_0 : i32, i32
  }
  func.func @transform_4(%arg0: i32) -> (i32, i32) {
    %c0_i32 = arith.constant 0 : i32
    %c0_i32_0 = arith.constant 0 : i32
    %c0_i32_1 = arith.constant 0 : i32
    return %c0_i32, %c0_i32_0 : i32, i32
  }
  func.func @transform_5(%arg0: i32) -> (i32, i32) {
    %c0_i32 = arith.constant 0 : i32
    %c0_i32_0 = arith.constant 0 : i32
    %c0_i32_1 = arith.constant 0 : i32
    return %c0_i32, %c0_i32_0 : i32, i32
  }
  func.func @transform_6(%arg0: i32) -> (i32, i32) {
    %c0_i32 = arith.constant 0 : i32
    %c0_i32_0 = arith.constant 0 : i32
    %c0_i32_1 = arith.constant 0 : i32
    return %c0_i32, %c0_i32_0 : i32, i32
  }
  func.func @transform_7(%arg0: i32) -> (i32, i32) {
    %c0_i32 = arith.constant 0 : i32
    %c0_i32_0 = arith.constant 0 : i32
    return %arg0, %c0_i32 : i32, i32
  }
}

</mosaic_0001>

<bundles_post_ra>
// kernel: tpu_custom_call.1
= control target key start
LH: loop header
LB: loop body
LE: loop exit
PB: predicated region body
PF: predicated region fallthrough
CT: control target
= control target key end

     0   :  { %vm54_vm0 = vcmask 1045504   ;;  %vm50_vm1 = vcmask 228352   ;;  %vm108_vm2 = vcmask 490496   ;;  %vm153_vm3 = vcmask 1046528   ;;  %s310_s1 = inlined_call_operand.vmem [shape: bf16[28,60], index: 1, kind: input, shape index: {}]   ;;  %s311_s3 = inlined_call_operand.vmem [shape: bf16[60,30], index: 3, kind: input, shape index: {}]   ;;  %s312_s0 = inlined_call_operand.vmem [shape: f32[8,28], index: 0, kind: input, shape index: {}]   ;;  %s313_s2 = inlined_call_operand.vmem [shape: f32[1,60], index: 2, kind: input, shape index: {}]   ;;  %s314_s4 = inlined_call_operand.vmem [shape: f32[1,30], index: 4, kind: input, shape index: {}]   ;;  %s315_s5 = inlined_call_operand.vmem [shape: bf16[30,1], index: 5, kind: input, shape index: {}]   ;;  %s316_s6 = inlined_call_operand.<no memory space> [shape: f32[1,1], index: 6, kind: input, shape index: {}]   ;;  %s317_s7 = inlined_call_operand.vmem [shape: f32[8,1], index: 7, kind: output, shape index: {}]  }
   0x1   :  { %v182_v0 = vld [vmem:[%s310_s1 + $0x8] sm:$0xf]  ;;  %v212_v1 = vld [vmem:[%s310_s1 + $0x8] sm:$0x30]  ;;  %v199_v3 = vld [vmem:[%s311_s3 + $0x18] sm:$0xf]  ;;  %v12_v25 = vstv %s316_s6 }
   0x2   :  { %v183_v2 = vor.u32 %v212_v1, %v182_v0  ;;  %v216_v4 = vld [vmem:[%s311_s3 + $0x18] sm:$0x30]  ;;  %v211_v7 = vld [vmem:[%s310_s1] sm:$0xff]  ;;  %v215_v10 = vld [vmem:[%s311_s3 + $0x10] sm:$0xff]  ;;  %13 = vst [vmem:[#allocation2] sm:$0x1] %v12_v25 }
   0x3   :  { %v200_v5 = vor.u32 %v216_v4, %v199_v3  ;;  %v29_v8 = vld [vmem:[%s312_s0] sm:$0xff]  ;;  %v214_v12 = vld [vmem:[%s311_s3 + $0x8] sm:$0xff]  ;;  %vm149_vm4 = vcmask 244736   ;;  %vm170_vm5 = vcmask 7168  }
   0x4   :  { %v56_v6 = vsel %vm54_vm0, %v183_v2, 0  ;;  %v30_v11 = vpack.c.bf16 %v29_v8, %v29_v8  ;;  %v213_v13 = vld [vmem:[%s311_s3] sm:$0xff]  ;;  %v208_v20 = vld [vmem:[%s315_s5 + $0x8] sm:$0xf]  ;;  %v218_v21 = vld [vmem:[%s315_s5 + $0x8] sm:$0x70] }
   0x5   :  { %64 = vmatpush.bf16.msra.mxu0 %v56_v6  ;;  %v113_v9 = vsel %vm54_vm0, %v200_v5, 0  ;;  %v219_v14 = vld [vmem:[%s313_s2] ss:$0 sm:$0xff]  ;;  %v209_v22 = vor.u32 %v218_v21, %v208_v20 }
   0x6   :  { %119 = vmatpush.bf16.msra.mxu1 %v113_v9  ;;  %v217_v24 = vld [vmem:[%s315_s5] sm:$0xff] }
   0x7   :  { %v155_v23 = vsel %vm153_vm3, %v209_v22, 0  ;;  %v220_v26 = vld [vmem:[%s314_s4] ss:$0 sm:$0xff] }
   0x8   :  { %163 = vmatpush.bf16.msra.mxu2 %v155_v23 }
   0x9   :  { %65 = vmatpush.bf16.msra.mxu0 %v211_v7  ;;  %v221_v32 = vld [vmem:[#allocation2] ss:$0 sm:$0xff] }
   0xa   :  { %120 = vmatpush.bf16.msra.mxu1 %v215_v10 }
   0xc   :  { %184 = vmatmul.msk.bf16.vlgmr.msra.gmra.mxu0 %vm50_vm1, %v30_v11  ;;  %164 = vmatpush.bf16.msra.mxu2 %v217_v24 }
   0xe   :  { %121 = vmatpush.bf16.msra.mxu1 %v214_v12 }
  0x12   :  { %122 = vmatpush.bf16.msra.mxu1 %v213_v13 }
  0x89   :  { %v67_v15 = vpop.f32.mrf.mxu0 }
  0x8a   :  { %v68_v16 = vadd.f32 %v219_v14, %v67_v15 }
  0x8c   :  { %v71_v17 = vmax.f32 %v68_v16, 0.0 }
  0x8e   :  { %v72_v18 = vpack.c.bf16 %v71_v17, %v71_v17 }
  0x90   :  { %201 = vmatmul.msk.bf16.vlgmr.msra.gmra.mxu1 %vm108_vm2, %v72_v18 }
  0x91   :  { %v69_v19 = vpop.f32.mrf.mxu0 }
 0x10d   :  { %v124_v27 = vpop.f32.mrf.mxu1 }
 0x10e   :  { %v125_v28 = vadd.f32 %v220_v26, %v124_v27 }
 0x110   :  { %v128_v29 = vmax.f32 %v125_v28, 0.0 }
 0x112   :  { %v129_v30 = vpack.c.bf16 %v128_v29, %v128_v29 }
 0x114   :  { %210 = vmatmul.msk.bf16.vlgmr.msra.gmra.mxu2 %vm149_vm4, %v129_v30 }
 0x115   :  { %v126_v31 = vpop.f32.mrf.mxu1 }
 0x197   :  { %v166_v33 = vpop.f32.mrf.mxu2 }
 0x198   :  { %v167_v34 = vadd.f32 %v221_v32, %v166_v33 }
 0x19a   :  { %171 = vst.msk [vmem:[%s317_s7] sm:$0xff] %vm170_vm5, %v167_v34 }
 0x19f   :  { %v168_v35 = vpop.f32.mrf.mxu2 }

</bundles_post_ra>
